<compile_context>
chip_gen: v6e
topology: v6e:2x2x1
jax: 0.10.0
libtpu: 0.0.40
codegen_flags: <defaults>
</compile_context>

<pallas_src>
import functools
import math

import numpy as np
import jax
import jax.numpy as jnp
from jax.experimental import pallas as pl
from jax.experimental.pallas import tpu as pltpu


def _dconv_kernel(x_ref, w_ref, b_ref, m_ref, o_ref, *, K, Wp, L, pe):
    """One row-tile of the fused depthwise conv.

    x_ref: (TR, L)    input rows; L = Hp*Wp pixels fused on the lane axis
    w_ref: (TR, K*K)  per-row (== per-channel) tap weights, f32
    b_ref: (TR, 1)    per-row bias, f32
    m_ref: (K*K, L)   per-tap validity mask: 1.0 where the tap stays inside the
                      image for that output pixel, 0.0 in the zero-padding halo
    o_ref: (TR, L)    output rows ("same"-grid conv result)
    """
    x = x_ref[...].astype(jnp.float32)
    acc = jnp.zeros(o_ref.shape, jnp.float32)
    for kh in range(K):
        for kw in range(K):
            t = kh * K + kw
            sh = (kh - pe) * Wp + (kw - pe)          # lane offset of this tap
            # shifted[l] = x[l + sh] for in-image lanes; lanes whose true source
            # is outside the image (incl. roll wrap-around) are zeroed by the mask.
            shifted = x if sh == 0 else pltpu.roll(x, shift=(-sh) % L, axis=1)
            # (TR,1) per-channel weight  x  (1,L) per-pixel mask  -> (TR,L)
            tap_w = w_ref[:, t:t + 1] * m_ref[t:t + 1, :]
            acc = acc + shifted * tap_w
    acc = acc + b_ref[...]                           # (TR,1) broadcast over lanes
    o_ref[...] = acc.astype(o_ref.dtype)


def _tap_masks(Hp, Wp, K, pe):
    """Host-side (K*K, Hp*Wp) f32 masks: 1.0 where tap (kh,kw) is in-image."""
    hh = np.arange(Hp)[:, None]
    ww = np.arange(Wp)[None, :]
    rows = []
    for kh in range(K):
        for kw in range(K):
            dh, dw = kh - pe, kw - pe
            ok = (hh + dh >= 0) & (hh + dh < Hp) & (ww + dw >= 0) & (ww + dw < Wp)
            rows.append(ok.reshape(-1))
    return np.stack(rows, 0).astype(np.float32)


def _pick_row_tile(R, C, L, itemsize, budget_bytes):
    """Rows per grid step: whole batch if it fits a conservative VMEM budget,
    otherwise the largest sublane- and channel-aligned tile that does."""
    per_row = L * (2 * itemsize + 2 * itemsize + 2 * 4)   # dbl-buf in/out + f32 acc/tmp
    max_rows = max(1, budget_bytes // per_row)
    if R <= max_rows:
        return R
    unit = 8 * C // math.gcd(8, C)                        # lcm(8, C)
    tr = max(unit, (max_rows // unit) * unit)
    return min(tr, R)


def dconv_forward(x_nchw, weight, bias, *, stride, padding):
    """Depthwise conv matching nn.Conv2d(C, C, K, stride, padding, groups=C).

    x_nchw : (N, C, H, W)
    weight : (C, 1, K, K)   (PyTorch depthwise layout)
    bias   : (C,)
    returns: (N, C, Ho, Wo)
    """
    N, C, H, W = x_nchw.shape
    K = int(weight.shape[2])
    s, p = int(stride), int(padding)

    Ho = (H + 2 * p - K) // s + 1
    Wo = (W + 2 * p - K) // s + 1

    # Fold any "excess" padding (2p > K-1) into an explicit pre-pad so the in-kernel
    # same-grid formulation covers every output position.  For the usual MobileNet
    # config (p = K//2, K odd) prepad == 0 and this is a no-op.
    prepad = max(0, p - (K - 1) // 2)
    if prepad:
        x_nchw = jnp.pad(
            x_nchw, ((0, 0), (0, 0), (prepad, prepad), (prepad, prepad)))
    pe = p - prepad                     # effective padding handled via masks, 2*pe <= K-1
    Hp, Wp = H + 2 * prepad, W + 2 * prepad
    L = Hp * Wp
    R = N * C

    # (N, C, Hp, Wp) -> (N*C, Hp*Wp): pure reshape, no HBM relayout.
    x_rows = x_nchw.reshape(R, L)

    TR = _pick_row_tile(R, C, L, x_rows.dtype.itemsize,
                        budget_bytes=4 * 1024 * 1024)
    reps = TR // C                      # TR is a multiple of C by construction
    w_rows = jnp.tile(weight.reshape(C, K * K).astype(jnp.float32), (reps, 1))  # (TR, K*K)
    b_rows = jnp.tile(bias.reshape(C, 1).astype(jnp.float32), (reps, 1))        # (TR, 1)
    masks = jnp.asarray(_tap_masks(Hp, Wp, K, pe))                              # (K*K, L)

    kernel = functools.partial(_dconv_kernel, K=K, Wp=Wp, L=L, pe=pe)
    z_rows = pl.pallas_call(
        kernel,
        out_shape=jax.ShapeDtypeStruct((R, L), x_rows.dtype),
        grid=(pl.cdiv(R, TR),),
        in_specs=[
            pl.BlockSpec((TR, L), lambda i: (i, 0)),
            pl.BlockSpec((TR, K * K), lambda i: (0, 0)),
            pl.BlockSpec((TR, 1), lambda i: (0, 0)),
            pl.BlockSpec((K * K, L), lambda i: (0, 0)),
        ],
        out_specs=pl.BlockSpec((TR, L), lambda i: (i, 0)),
        compiler_params=pltpu.CompilerParams(
            dimension_semantics=("parallel",),          # row tiles shard across TCs (v7x)
            vmem_limit_bytes=32 * 1024 * 1024),
    )(x_rows, w_rows, b_rows, masks)

    z = z_rows.reshape(N, C, Hp, Wp)
    if s == 1 and Ho == Hp and Wo == Wp:
        return z           # fast path (stride 1, "same" padding): no extra HBM pass
    # TODO(synk): stride>1 / valid-padding path decimates the same-grid result with one
    # XLA strided slice; a dedicated strided-output kernel would skip the unused taps.
    return jax.lax.slice(
        z, (0, 0, 0, 0), (N, C, (Ho - 1) * s + 1, (Wo - 1) * s + 1), (1, 1, s, s))


if __name__ == "__main__":
    # Module config: DConv(in_channels=8, kernel_size=3, stride=1, padding=1)
    N, C, H, W = 2, 8, 16, 16
    K = 3

    key = jax.random.PRNGKey(0)
    kx, kw, kb = jax.random.split(key, 3)
    x = jax.random.normal(kx, (N, C, H, W), dtype=jnp.float32)
    weight = jax.random.normal(kw, (C, 1, K, K), dtype=jnp.float32) * 0.1
    bias = jax.random.normal(kb, (C,), dtype=jnp.float32) * 0.1

    def torch_ref(x, weight, bias, stride, padding):
        return jax.lax.conv_general_dilated(
            x, weight,
            window_strides=(stride, stride),
            padding=((padding, padding), (padding, padding)),
            dimension_numbers=("NCHW", "OIHW", "NCHW"),
            feature_group_count=C,
        ) + bias.reshape(1, C, 1, 1)

    # Stride-1 "same" config (the DConv demo config): fully fused fast path.
    out = dconv_forward(x, weight, bias, stride=1, padding=1)
    out = jax.block_until_ready(out)
    ref = torch_ref(x, weight, bias, 1, 1)
    assert out.shape == ref.shape, (out.shape, ref.shape)
    assert jnp.allclose(out, ref, atol=1e-5, rtol=1e-5), "stride-1 mismatch vs reference"

    # Stride-2 config (MobileNet downsampling DConv): exercises the general path.
    out2 = dconv_forward(x, weight, bias, stride=2, padding=1)
    out2 = jax.block_until_ready(out2)
    ref2 = torch_ref(x, weight, bias, 2, 1)
    assert out2.shape == ref2.shape, (out2.shape, ref2.shape)
    assert jnp.allclose(out2, ref2, atol=1e-5, rtol=1e-5), "stride-2 mismatch vs reference"

    print("KERNEL_OK")
</pallas_src>

<mosaic_0001>
module attributes {stable_mosaic.version = 11 : i64} {
  func.func @_dconv_kernel(%arg0: i32, %arg1: memref<16x256xf32, #tpu.memory_space<vmem>>, %arg2: memref<16x9xf32, #tpu.memory_space<vmem>>, %arg3: memref<16x1xf32, #tpu.memory_space<vmem>>, %arg4: memref<9x256xf32, #tpu.memory_space<vmem>>, %arg5: memref<16x256xf32, #tpu.memory_space<vmem>>) attributes {dimension_semantics = [#tpu.dimension_semantics<parallel>], iteration_bounds = array<i64: 1>, scalar_prefetch = 0 : i64, scratch_operands = 0 : i64, tpu.core_type = #tpu.core_type<tc>, window_params = [{transform_indices = @transform_0, window_bounds = array<i64: 16, 256>}, {pipeline_mode = #tpu.pipeline_mode<synchronous>, transform_indices = @transform_1, window_bounds = array<i64: 16, 9>}, {pipeline_mode = #tpu.pipeline_mode<synchronous>, transform_indices = @transform_2, window_bounds = array<i64: 16, 1>}, {pipeline_mode = #tpu.pipeline_mode<synchronous>, transform_indices = @transform_3, window_bounds = array<i64: 9, 256>}, {transform_indices = @transform_4, window_bounds = array<i64: 16, 256>}]} {
    %c0 = arith.constant 0 : index
    %c0_0 = arith.constant 0 : index
    %0 = vector.load %arg1[%c0, %c0_0] : memref<16x256xf32, #tpu.memory_space<vmem>>, vector<16x256xf32>
    %cst = arith.constant 0.000000e+00 : f32
    %1 = vector.broadcast %cst : f32 to vector<16x256xf32>
    %c17_i32 = arith.constant 17 : i32
    %2 = tpu.dynamic_rotate %0 by %c17_i32 dim 1 : vector<16x256xf32>, i32 -> vector<16x256xf32>
    %c0_1 = arith.constant 0 : index
    %c0_2 = arith.constant 0 : index
    %3 = vector.load %arg2[%c0_1, %c0_2] : memref<16x9xf32, #tpu.memory_space<vmem>>, vector<16x1xf32>
    %c0_3 = arith.constant 0 : index
    %c0_4 = arith.constant 0 : index
    %4 = vector.load %arg4[%c0_3, %c0_4] : memref<9x256xf32, #tpu.memory_space<vmem>>, vector<1x256xf32>
    %5 = vector.broadcast %3 : vector<16x1xf32> to vector<16x256xf32>
    %6 = vector.broadcast %4 : vector<1x256xf32> to vector<16x256xf32>
    %7 = arith.mulf %5, %6 : vector<16x256xf32>
    %8 = arith.mulf %2, %7 : vector<16x256xf32>
    %9 = arith.addf %1, %8 : vector<16x256xf32>
    %c16_i32 = arith.constant 16 : i32
    %10 = tpu.dynamic_rotate %0 by %c16_i32 dim 1 : vector<16x256xf32>, i32 -> vector<16x256xf32>
    %c0_5 = arith.constant 0 : index
    %c1 = arith.constant 1 : index
    %11 = vector.load %arg2[%c0_5, %c1] : memref<16x9xf32, #tpu.memory_space<vmem>>, vector<16x1xf32>
    %c1_6 = arith.constant 1 : index
    %c0_7 = arith.constant 0 : index
    %12 = vector.load %arg4[%c1_6, %c0_7] : memref<9x256xf32, #tpu.memory_space<vmem>>, vector<1x256xf32>
    %13 = vector.broadcast %11 : vector<16x1xf32> to vector<16x256xf32>
    %14 = vector.broadcast %12 : vector<1x256xf32> to vector<16x256xf32>
    %15 = arith.mulf %13, %14 : vector<16x256xf32>
    %16 = arith.mulf %10, %15 : vector<16x256xf32>
    %17 = arith.addf %9, %16 : vector<16x256xf32>
    %c15_i32 = arith.constant 15 : i32
    %18 = tpu.dynamic_rotate %0 by %c15_i32 dim 1 : vector<16x256xf32>, i32 -> vector<16x256xf32>
    %c0_8 = arith.constant 0 : index
    %c2 = arith.constant 2 : index
    %19 = vector.load %arg2[%c0_8, %c2] : memref<16x9xf32, #tpu.memory_space<vmem>>, vector<16x1xf32>
    %c2_9 = arith.constant 2 : index
    %c0_10 = arith.constant 0 : index
    %20 = vector.load %arg4[%c2_9, %c0_10] : memref<9x256xf32, #tpu.memory_space<vmem>>, vector<1x256xf32>
    %21 = vector.broadcast %19 : vector<16x1xf32> to vector<16x256xf32>
    %22 = vector.broadcast %20 : vector<1x256xf32> to vector<16x256xf32>
    %23 = arith.mulf %21, %22 : vector<16x256xf32>
    %24 = arith.mulf %18, %23 : vector<16x256xf32>
    %25 = arith.addf %17, %24 : vector<16x256xf32>
    %c1_i32 = arith.constant 1 : i32
    %26 = tpu.dynamic_rotate %0 by %c1_i32 dim 1 : vector<16x256xf32>, i32 -> vector<16x256xf32>
    %c0_11 = arith.constant 0 : index
    %c3 = arith.constant 3 : index
    %27 = vector.load %arg2[%c0_11, %c3] : memref<16x9xf32, #tpu.memory_space<vmem>>, vector<16x1xf32>
    %c3_12 = arith.constant 3 : index
    %c0_13 = arith.constant 0 : index
    %28 = vector.load %arg4[%c3_12, %c0_13] : memref<9x256xf32, #tpu.memory_space<vmem>>, vector<1x256xf32>
    %29 = vector.broadcast %27 : vector<16x1xf32> to vector<16x256xf32>
    %30 = vector.broadcast %28 : vector<1x256xf32> to vector<16x256xf32>
    %31 = arith.mulf %29, %30 : vector<16x256xf32>
    %32 = arith.mulf %26, %31 : vector<16x256xf32>
    %33 = arith.addf %25, %32 : vector<16x256xf32>
    %c0_14 = arith.constant 0 : index
    %c4 = arith.constant 4 : index
    %34 = vector.load %arg2[%c0_14, %c4] : memref<16x9xf32, #tpu.memory_space<vmem>>, vector<16x1xf32>
    %c4_15 = arith.constant 4 : index
    %c0_16 = arith.constant 0 : index
    %35 = vector.load %arg4[%c4_15, %c0_16] : memref<9x256xf32, #tpu.memory_space<vmem>>, vector<1x256xf32>
    %36 = vector.broadcast %34 : vector<16x1xf32> to vector<16x256xf32>
    %37 = vector.broadcast %35 : vector<1x256xf32> to vector<16x256xf32>
    %38 = arith.mulf %36, %37 : vector<16x256xf32>
    %39 = arith.mulf %0, %38 : vector<16x256xf32>
    %40 = arith.addf %33, %39 : vector<16x256xf32>
    %c255_i32 = arith.constant 255 : i32
    %41 = tpu.dynamic_rotate %0 by %c255_i32 dim 1 : vector<16x256xf32>, i32 -> vector<16x256xf32>
    %c0_17 = arith.constant 0 : index
    %c5 = arith.constant 5 : index
    %42 = vector.load %arg2[%c0_17, %c5] : memref<16x9xf32, #tpu.memory_space<vmem>>, vector<16x1xf32>
    %c5_18 = arith.constant 5 : index
    %c0_19 = arith.constant 0 : index
    %43 = vector.load %arg4[%c5_18, %c0_19] : memref<9x256xf32, #tpu.memory_space<vmem>>, vector<1x256xf32>
    %44 = vector.broadcast %42 : vector<16x1xf32> to vector<16x256xf32>
    %45 = vector.broadcast %43 : vector<1x256xf32> to vector<16x256xf32>
    %46 = arith.mulf %44, %45 : vector<16x256xf32>
    %47 = arith.mulf %41, %46 : vector<16x256xf32>
    %48 = arith.addf %40, %47 : vector<16x256xf32>
    %c241_i32 = arith.constant 241 : i32
    %49 = tpu.dynamic_rotate %0 by %c241_i32 dim 1 : vector<16x256xf32>, i32 -> vector<16x256xf32>
    %c0_20 = arith.constant 0 : index
    %c6 = arith.constant 6 : index
    %50 = vector.load %arg2[%c0_20, %c6] : memref<16x9xf32, #tpu.memory_space<vmem>>, vector<16x1xf32>
    %c6_21 = arith.constant 6 : index
    %c0_22 = arith.constant 0 : index
    %51 = vector.load %arg4[%c6_21, %c0_22] : memref<9x256xf32, #tpu.memory_space<vmem>>, vector<1x256xf32>
    %52 = vector.broadcast %50 : vector<16x1xf32> to vector<16x256xf32>
    %53 = vector.broadcast %51 : vector<1x256xf32> to vector<16x256xf32>
    %54 = arith.mulf %52, %53 : vector<16x256xf32>
    %55 = arith.mulf %49, %54 : vector<16x256xf32>
    %56 = arith.addf %48, %55 : vector<16x256xf32>
    %c240_i32 = arith.constant 240 : i32
    %57 = tpu.dynamic_rotate %0 by %c240_i32 dim 1 : vector<16x256xf32>, i32 -> vector<16x256xf32>
    %c0_23 = arith.constant 0 : index
    %c7 = arith.constant 7 : index
    %58 = vector.load %arg2[%c0_23, %c7] : memref<16x9xf32, #tpu.memory_space<vmem>>, vector<16x1xf32>
    %c7_24 = arith.constant 7 : index
    %c0_25 = arith.constant 0 : index
    %59 = vector.load %arg4[%c7_24, %c0_25] : memref<9x256xf32, #tpu.memory_space<vmem>>, vector<1x256xf32>
    %60 = vector.broadcast %58 : vector<16x1xf32> to vector<16x256xf32>
    %61 = vector.broadcast %59 : vector<1x256xf32> to vector<16x256xf32>
    %62 = arith.mulf %60, %61 : vector<16x256xf32>
    %63 = arith.mulf %57, %62 : vector<16x256xf32>
    %64 = arith.addf %56, %63 : vector<16x256xf32>
    %c239_i32 = arith.constant 239 : i32
    %65 = tpu.dynamic_rotate %0 by %c239_i32 dim 1 : vector<16x256xf32>, i32 -> vector<16x256xf32>
    %c0_26 = arith.constant 0 : index
    %c8 = arith.constant 8 : index
    %66 = vector.load %arg2[%c0_26, %c8] : memref<16x9xf32, #tpu.memory_space<vmem>>, vector<16x1xf32>
    %c8_27 = arith.constant 8 : index
    %c0_28 = arith.constant 0 : index
    %67 = vector.load %arg4[%c8_27, %c0_28] : memref<9x256xf32, #tpu.memory_space<vmem>>, vector<1x256xf32>
    %68 = vector.broadcast %66 : vector<16x1xf32> to vector<16x256xf32>
    %69 = vector.broadcast %67 : vector<1x256xf32> to vector<16x256xf32>
    %70 = arith.mulf %68, %69 : vector<16x256xf32>
    %71 = arith.mulf %65, %70 : vector<16x256xf32>
    %72 = arith.addf %64, %71 : vector<16x256xf32>
    %c0_29 = arith.constant 0 : index
    %c0_30 = arith.constant 0 : index
    %73 = vector.load %arg3[%c0_29, %c0_30] : memref<16x1xf32, #tpu.memory_space<vmem>>, vector<16x1xf32>
    %74 = vector.broadcast %73 : vector<16x1xf32> to vector<16x256xf32>
    %75 = arith.addf %72, %74 : vector<16x256xf32>
    %c0_31 = arith.constant 0 : index
    %c0_32 = arith.constant 0 : index
    %76 = vector.load %arg5[%c0_31, %c0_32] : memref<16x256xf32, #tpu.memory_space<vmem>>, vector<16x256xf32>
    tpu.vector_store %arg5[%c0_31, %c0_32], %75 {strides = array<i32>} : memref<16x256xf32, #tpu.memory_space<vmem>>, vector<16x256xf32>,
    return
  }
  func.func @transform_0(%arg0: i32) -> (i32, i32) {
    %c0_i32 = arith.constant 0 : i32
    %c0_i32_0 = arith.constant 0 : i32
    return %arg0, %c0_i32 : i32, i32
  }
  func.func @transform_1(%arg0: i32) -> (i32, i32) {
    %c0_i32 = arith.constant 0 : i32
    %c0_i32_0 = arith.constant 0 : i32
    %c0_i32_1 = arith.constant 0 : i32
    return %c0_i32, %c0_i32_0 : i32, i32
  }
  func.func @transform_2(%arg0: i32) -> (i32, i32) {
    %c0_i32 = arith.constant 0 : i32
    %c0_i32_0 = arith.constant 0 : i32
    %c0_i32_1 = arith.constant 0 : i32
    return %c0_i32, %c0_i32_0 : i32, i32
  }
  func.func @transform_3(%arg0: i32) -> (i32, i32) {
    %c0_i32 = arith.constant 0 : i32
    %c0_i32_0 = arith.constant 0 : i32
    %c0_i32_1 = arith.constant 0 : i32
    return %c0_i32, %c0_i32_0 : i32, i32
  }
  func.func @transform_4(%arg0: i32) -> (i32, i32) {
    %c0_i32 = arith.constant 0 : i32
    %c0_i32_0 = arith.constant 0 : i32
    return %arg0, %c0_i32 : i32, i32
  }
}

</mosaic_0001>

<bundles_post_ra>
// kernel: tpu_custom_call.1
= control target key start
LH: loop header
LB: loop body
LE: loop exit
PB: predicated region body
PF: predicated region fallthrough
CT: control target
= control target key end

     0   :  { %9 = vsyncpa [#allocation3], 0  ;;  %s955_s0 = inlined_call_operand.hbm [shape: f32[16,256], index: 0, kind: input, shape index: {}]   ;;  %s956_s1 = inlined_call_operand.vmem [shape: f32[16,9], index: 1, kind: input, shape index: {}]   ;;  %s957_s2 = inlined_call_operand.vmem [shape: f32[16,1], index: 2, kind: input, shape index: {}]   ;;  %s958_s3 = inlined_call_operand.hbm [shape: f32[9,256], index: 3, kind: input, shape index: {}]   ;;  %s959_s4 = inlined_call_operand.hbm [shape: f32[16,256], index: 4, kind: output, shape index: {}]  }
   0x1   :  { %10 = vsyncpa [#allocation6], 0 }
   0x2   :  { %11 = vsyncpa [#allocation4], 0  ;;  %s598_s15 = smov [#allocation2]  }
   0x3   :  { %s17_s16 = sshll.u32 %s598_s15, 4  ;;  %s18_s16 = int_to_ptr.vmem [resolvable:$true] %s17_s16 }
   0x4   :  { %s540_s17 = scalar_lea.vmem %s18_s16, 512  ;;  %p545_p1 = scmp.lt.s32.totalorder %s18_s16, %s18_s16 }
   0x5   :  { %p541_p0 = scmp.ne.s32.totalorder %s18_s16, %s540_s17  ;;  %p546_p2 = scmp.lt.s32.totalorder %s540_s17, %s540_s17 }
   0x7   :  { %p547_p3 = por %p546_p2, %p545_p1 }
   0x9   :  { %p548_p4 = pnand %p547_p3, %p541_p0 }
   0xb   :  { %551 = shalt.err (!%p548_p4)
}
   0xc   :  { %s599_s18 = smov 256   ;;  %s600_s19 = smov 16  }
   0xd   :  { %23 = dma.hbm_to_vmem [thread:$0]  %s955_s0, 512, %s18_s16, [#allocation3], %s599_s18, %s599_s18, %s600_s19  }
   0xe   :  { %s601_s22 = smov [#allocation5]  }
   0xf   :  { %s33_s23 = sshll.u32 %s601_s22, 4  ;;  %s34_s23 = int_to_ptr.vmem [resolvable:$true] %s33_s23 }
  0x10   :  { %s560_s24 = scalar_lea.vmem %s34_s23, 512  ;;  %p565_p6 = scmp.lt.s32.totalorder %s34_s23, %s34_s23 }
  0x11   :  { %p561_p5 = scmp.ne.s32.totalorder %s34_s23, %s560_s24  ;;  %p566_p7 = scmp.lt.s32.totalorder %s560_s24, %s560_s24 }
  0x13   :  { %p567_p8 = por %p566_p7, %p565_p6 }
  0x15   :  { %p568_p9 = pnand %p567_p8, %p561_p5 }
  0x17   :  { %571 = shalt.err (!%p568_p9)
}
  0x18   :  { %39 = dma.hbm_to_vmem [thread:$0]  %s958_s3, 512, %s34_s23, [#allocation6], %s599_s18, %s599_s18, %s600_s19  }
  0x19   :  { %592 = dma.done.wait [#allocation3], 512  }
  0x1a   :  { %593 = vsyncadd [#allocation3], 4294966784 }
  0x1b   :  { %594 = dma.done.wait [#allocation6], 512  }
  0x1c   :  { %595 = vsyncadd [#allocation6], 4294966784  ;;  %v602_v0 = vmov 0   ;;  %v603_v1 = vmov 1   ;;  %v657_v2 = vld [vmem:[#allocation2 + $0x8] sm:$0xff]  ;;  %v659_v3 = vld [vmem:[#allocation2] sm:$0xff]  ;;  %v58_v16 = vlaneseq }
  0x1d   :  { %515 = vset.pattern.permute.xlu1 %v602_v0  ;;  %517 = vset.pattern.permute.xlu0 %v603_v1  ;;  %s604_s0 = smov 17   ;;  %v663_v4 = vld [vmem:[#allocation2 + $0x18] sm:$0xff]  ;;  %v665_v5 = vld [vmem:[#allocation2 + $0x10] sm:$0xff]  ;;  %v672_v6 = vld [vmem:[%s956_s1 + $0x8] sm:$0xff]  ;;  %s605_s30 = smov 15   ;;  %v606_v8 = vmov 2  }
  0x1e   :  { %54 = vrot.lane.b32.xlu1 %v657_v2, %s604_s0  ;;  %50 = vrot.lane.b32.xlu0 %v659_v3, %s604_s0  ;;  %v65_v7 = vld [vmem:[%s956_s1] sm:$0xff]  ;;  %s607_s5 = smov 1   ;;  %v608_v9 = vmov 3   ;;  %v609_v10 = vmov 5   ;;  %v610_v11 = vmov 6   ;;  %s611_s1 = smov 127  }
  0x1f   :  { %v612_v12 = vmov 8   ;;  %v613_v13 = vmov 4   ;;  %s614_s6 = smov 113   ;;  %v615_v14 = vmov 7   ;;  %s616_s7 = smov 112   ;;  %v457_v15 = vld [vmem:[%s957_s2 + $0x8] sm:$0xff] }
  0x20   :  { %s617_s8 = smov 111   ;;  %v726_v17 = vand.u32 127, %v58_v16  ;;  %v456_v18 = vld [vmem:[%s957_s2] sm:$0xff]  ;;  %v80_v31 = vshrl.u32 %v58_v16, 7  ;;  %s618_s2 = smov [#allocation7]  }
  0x21   :  { %v115_v33 = vld [vmem:[#allocation5 + $0x1] ss:$8 sm:$0x3]  ;;  %v161_v39 = vld [vmem:[#allocation5 + $0x2] ss:$8 sm:$0x3] }
  0x22   :  { %56 = vrot.lane.b32.xlu1 %v663_v4, %s604_s0  ;;  %52 = vrot.lane.b32.xlu0 %v665_v5, %s604_s0  ;;  %vm60_vm0 = vcmp.lt.s32.totalorder %v726_v17, 17  ;;  %vm109_vm1 = vcmp.lt.s32.totalorder %v726_v17, 16  ;;  %v746_v35 = vsub.s32 0, %v80_v31  ;;  %v748_v36 = vsub.s32 1, %v80_v31  ;;  %s481_s13 = sshll.u32 %s618_s2, 4  ;;  %s482_s13 = int_to_ptr.vmem [resolvable:$true] %s481_s13 }
  0x23   :  { %vm155_vm2 = vcmp.lt.s32.totalorder %v726_v17, 15  ;;  %vm201_vm3 = vcmp.lt.s32.totalorder %v726_v17, 1  ;;  %vm280_vm4 = vcmp.lt.s32.totalorder %v726_v17, 127  ;;  %vm326_vm5 = vcmp.lt.s32.totalorder %v726_v17, 113  ;;  %s572_s14 = scalar_lea.vmem %s482_s13, 512  ;;  %p577_p11 = scmp.lt.s32.totalorder %s482_s13, %s482_s13 }
  0x24   :  { %v128_v40 = vrot.slane %v115_v33, %v746_v35  ;;  %v132_v41 = vrot.slane %v115_v33, %v748_v36  ;;  %v174_v46 = vrot.slane %v161_v39, %v746_v35  ;;  %v178_v47 = vrot.slane %v161_v39, %v748_v36  ;;  %v207_v33 = vld [vmem:[#allocation5 + $0x3] ss:$8 sm:$0x3]  ;;  %p573_p10 = scmp.ne.s32.totalorder %s482_s13, %s572_s14  ;;  %p578_p12 = scmp.lt.s32.totalorder %s572_s14, %s572_s14 }
  0x25   :  { %vm372_vm6 = vcmp.lt.s32.totalorder %v726_v17, 112  ;;  %vm418_vm7 = vcmp.lt.s32.totalorder %v726_v17, 111 }
  0x26   :  { %75 = vperm.xlu1 %515, %v672_v6   ;;  %103 = vrot.lane.b32.xlu0 %v665_v5, %s600_s19  ;;  %p579_p13 = por %p578_p12, %p577_p11 }
  0x28   :  { %p580_p0 = pnand %p579_p13, %p573_p10 }
  0x2a   :  { %101 = vrot.lane.b32.xlu1 %v659_v3, %s600_s19  ;;  %107 = vrot.lane.b32.xlu0 %v663_v4, %s600_s19 }
  0x2b   :  { %516 = vset.pattern.permute.xlu1 %v603_v1 }
  0x2e   :  { %105 = vrot.lane.b32.xlu1 %v657_v2, %s600_s19  ;;  %121 = vperm.xlu0 %517, %v672_v6  }
  0x32   :  { %117 = vperm.xlu1 %516, %v65_v7   ;;  %151 = vrot.lane.b32.xlu0 %v657_v2, %s605_s30 }
  0x33   :  { %518 = vset.pattern.permute.xlu0 %v606_v8 }
  0x36   :  { %147 = vrot.lane.b32.xlu1 %v659_v3, %s605_s30  ;;  %163 = vperm.xlu0 %518, %v65_v7  }
  0x37   :  { %519 = vset.pattern.permute.xlu1 %v606_v8 }
  0x3a   :  { %149 = vrot.lane.b32.xlu1 %v665_v5, %s605_s30  ;;  %195 = vrot.lane.b32.xlu0 %v665_v5, %s607_s5 }
  0x3b   :  { %521 = vset.pattern.permute.xlu0 %v608_v9 }
  0x3e   :  { %153 = vrot.lane.b32.xlu1 %v663_v4, %s605_s30  ;;  %199 = vrot.lane.b32.xlu0 %v663_v4, %s607_s5 }
  0x42   :  { %167 = vperm.xlu1 %519, %v672_v6   ;;  %213 = vperm.xlu0 %521, %v672_v6  }
  0x46   :  { %193 = vrot.lane.b32.xlu1 %v659_v3, %s607_s5  ;;  %523 = vset.pattern.permute.xlu0 %v609_v10 }
  0x47   :  { %288 = vperm.xlu0 %523, %v65_v7   ;;  %520 = vset.pattern.permute.xlu1 %v608_v9 }
  0x4a   :  { %197 = vrot.lane.b32.xlu1 %v657_v2, %s607_s5 }
  0x4b   :  { %526 = vset.pattern.permute.xlu0 %v610_v11 }
  0x4c   :  { %338 = vperm.xlu0 %526, %v672_v6  }
  0x4e   :  { %209 = vperm.xlu1 %520, %v65_v7  }
  0x50   :  { %272 = vrot.lane.b32.xlu0 %v659_v3, %s611_s1 }
  0x51   :  { %528 = vset.pattern.permute.xlu0 %v612_v12 }
  0x52   :  { %522 = vset.pattern.permute.xlu1 %v613_v13 }
  0x53   :  { %242 = vperm.xlu1 %522, %v65_v7  }
  0x54   :  { %276 = vrot.lane.b32.xlu0 %v657_v2, %s611_s1 }
  0x57   :  { %246 = vperm.xlu1 %522, %v672_v6  }
  0x58   :  { %426 = vperm.xlu0 %528, %v65_v7  }
  0x5b   :  { %524 = vset.pattern.permute.xlu1 %v609_v10 }
  0x5c   :  { %292 = vperm.xlu1 %524, %v672_v6   ;;  %529 = vset.pattern.permute.xlu0 %v602_v0 }
  0x5d   :  { %70 = vperm.xlu0 %529, %v65_v7  }
  0x60   :  { %525 = vset.pattern.permute.xlu1 %v610_v11 }
  0x61   :  { %334 = vperm.xlu1 %525, %v65_v7   ;;  %320 = vrot.lane.b32.xlu0 %v665_v5, %s614_s6 }
  0x65   :  { %527 = vset.pattern.permute.xlu1 %v615_v14  ;;  %324 = vrot.lane.b32.xlu0 %v663_v4, %s614_s6  ;;  %v67_v14 = vld [vmem:[#allocation5] ss:$8 sm:$0x3] }
  0x66   :  { %380 = vperm.xlu1 %527, %v65_v7   ;;  %v86_v16 = vrot.slane %v67_v14, %v748_v36 }
  0x69   :  { %366 = vrot.lane.b32.xlu0 %v665_v5, %s616_s7 }
  0x6a   :  { %384 = vperm.xlu1 %527, %v672_v6  }
  0x6d   :  { %370 = vrot.lane.b32.xlu0 %v663_v4, %s616_s7 }
  0x6e   :  { %274 = vrot.lane.b32.xlu1 %v665_v5, %s611_s1 }
  0x6f   :  { %530 = vset.pattern.permute.xlu1 %v612_v12 }
  0x71   :  { %412 = vrot.lane.b32.xlu0 %v665_v5, %s617_s8 }
  0x72   :  { %278 = vrot.lane.b32.xlu1 %v663_v4, %s611_s1 }
  0x75   :  { %416 = vrot.lane.b32.xlu0 %v663_v4, %s617_s8 }
  0x76   :  { %430 = vperm.xlu1 %530, %v672_v6  }
  0x79   :  { %465 = vperm.xlu0 %529, %v457_v15   ;;  %v82_v15 = vrot.slane %v67_v14, %v746_v35 }
  0x7a   :  { %318 = vrot.lane.b32.xlu1 %v659_v3, %s614_s6 }
  0x7b   :  { %531 = vset.pattern.permute.xlu1 %v602_v0 }
  0x7e   :  { %322 = vrot.lane.b32.xlu1 %v657_v2, %s614_s6 }
  0x82   :  { %364 = vrot.lane.b32.xlu1 %v659_v3, %s616_s7 }
  0x86   :  { %368 = vrot.lane.b32.xlu1 %v657_v2, %s616_s7 }
  0x8a   :  { %410 = vrot.lane.b32.xlu1 %v659_v3, %s617_s8 }
  0x8e   :  { %414 = vrot.lane.b32.xlu1 %v657_v2, %s617_s8 }
  0x90   :  { %v55_v19 = vpop.permute.xlu1 %54  ;;  %v51_v20 = vpop.permute.xlu0 %50 }
  0x91   :  { %v733_v21 = vsel %vm60_vm0, %v51_v20, %v55_v19  ;;  %v63_v22 = vsel %vm60_vm0, %v55_v19, %v51_v20 }
  0x92   :  { %460 = vperm.xlu1 %531, %v456_v18  }
  0x94   :  { %v57_v23 = vpop.permute.xlu1 %56  ;;  %v53_v24 = vpop.permute.xlu0 %52 }
  0x95   :  { %v735_v25 = vsel %vm60_vm0, %v53_v24, %v57_v23  ;;  %v737_v26 = vsel %vm60_vm0, %v57_v23, %v53_v24 }
  0x98   :  { %v739_v27 = vpop.permute.xlu0 %103 }
  0x9c   :  { %v743_v29 = vpop.permute.xlu0 %107 }
  0x9d   :  { %v111_v39 = vsel %vm109_vm1, %v739_v27, %v743_v29 }
  0xa1   :  { %v741_v28 = vpop.permute.xlu1 %75 }
  0xa5   :  { %v102_v30 = vpop.permute.xlu1 %101 }
  0xa9   :  { %v106_v32 = vpop.permute.xlu1 %105  ;;  %v122_v34 = vpop.permute.xlu0 %121 }
  0xaa   :  { %v110_v37 = vsel %vm109_vm1, %v102_v30, %v106_v32  ;;  %v112_v38 = vsel %vm109_vm1, %v106_v32, %v102_v30 }
  0xad   :  { %v118_v42 = vpop.permute.xlu1 %117  ;;  %v152_v43 = vpop.permute.xlu0 %151 }
  0xae   :  { %v135_v44 = vmul.f32 %v128_v40, %v118_v42  ;;  %v136_v45 = vmul.f32 %v132_v41, %v118_v42  ;;  %v113_v42 = vsel %vm109_vm1, %v743_v29, %v739_v27 }
  0xb0   :  { %v139_v48 = vmul.f32 %v135_v44, %v112_v38  ;;  %v140_v49 = vmul.f32 %v136_v45, %v110_v37  ;;  %v92_v44 = vmul.f32 %v86_v16, %v741_v28  ;;  %v240_v45 = vld [vmem:[#allocation5 + $0x4] ss:$8 sm:$0x3] }
  0xb1   :  { %v148_v50 = vpop.permute.xlu1 %147  ;;  %v164_v51 = vpop.permute.xlu0 %163 }
  0xb2   :  { %v156_v52 = vsel %vm155_vm2, %v148_v50, %v152_v43  ;;  %v158_v53 = vsel %vm155_vm2, %v152_v43, %v148_v50  ;;  %v181_v54 = vmul.f32 %v174_v46, %v164_v51  ;;  %v182_v55 = vmul.f32 %v178_v47, %v164_v51 }
  0xb3   :  { %v138_v43 = vmul.f32 %v132_v41, %v122_v34  ;;  %v817_v41 = vrot.slane %v240_v45, %v748_v36 }
  0xb4   :  { %v185_v56 = vmul.f32 %v181_v54, %v158_v53  ;;  %v186_v57 = vmul.f32 %v182_v55, %v156_v52  ;;  %v805_v52 = vrot.slane %v207_v33, %v746_v35  ;;  %v808_v53 = vrot.slane %v207_v33, %v748_v36  ;;  %v424_v33 = vld [vmem:[#allocation5 + $0x10] ss:$8 sm:$0x3] }
  0xb5   :  { %v150_v58 = vpop.permute.xlu1 %149  ;;  %v196_v59 = vpop.permute.xlu0 %195 }
  0xb9   :  { %v154_v60 = vpop.permute.xlu1 %153  ;;  %v200_v61 = vpop.permute.xlu0 %199 }
  0xba   :  { %v157_v54 = vsel %vm155_vm2, %v150_v58, %v154_v60  ;;  %v159_v55 = vsel %vm155_vm2, %v154_v60, %v150_v58 }
  0xbd   :  { %v168_v62 = vpop.permute.xlu1 %167  ;;  %v214_v63 = vpop.permute.xlu0 %213 }
  0xbe   :  { %v184_v51 = vmul.f32 %v178_v47, %v168_v62  ;;  %v96_v47 = vmul.f32 %v92_v44, %v735_v25  ;;  %v230_v14 = vmul.f32 %v808_v53, %v214_v63  ;;  %v205_v25 = vsel %vm201_vm3, %v200_v61, %v196_v59 }
  0xc1   :  { %v763_v0 = vpop.permute.xlu1 %193 }
  0xc2   :  { %v765_v1 = vpop.permute.xlu0 %288 }
  0xc5   :  { %v767_v6 = vpop.permute.xlu1 %197 }
  0xc7   :  { %v769_v7 = vpop.permute.xlu0 %338 }
  0xc9   :  { %v771_v8 = vpop.permute.xlu1 %209 }
  0xcb   :  { %v773_v9 = vpop.permute.xlu0 %272 }
  0xce   :  { %v775_v10 = vpop.permute.xlu1 %242 }
  0xcf   :  { %v777_v11 = vpop.permute.xlu0 %276 }
  0xd2   :  { %v247_v12 = vpop.permute.xlu1 %246 }
  0xd3   :  { %v779_v13 = vpop.permute.xlu0 %426  ;;  %v263_v60 = vmul.f32 %v817_v41, %v247_v12 }
  0xd5   :  { %v267_v44 = vmul.f32 %v263_v60, %v663_v4 }
  0xd7   :  { %v783_v18 = vpop.permute.xlu1 %292 }
  0xd8   :  { %v71_v19 = vpop.permute.xlu0 %70 }
  0xd9   :  { %v89_v20 = vmul.f32 %v82_v15, %v71_v19  ;;  %v90_v23 = vmul.f32 %v86_v16, %v71_v19  ;;  %v203_v19 = vsel %vm201_vm3, %v196_v59, %v200_v61  ;;  %v378_v59 = vld [vmem:[#allocation5 + $0x7] ss:$8 sm:$0x3] }
  0xdb   :  { %v93_v24 = vmul.f32 %v89_v20, %v63_v22  ;;  %v94_v30 = vmul.f32 %v90_v23, %v733_v21  ;;  %v137_v22 = vmul.f32 %v128_v40, %v122_v34  ;;  %v91_v21 = vmul.f32 %v82_v15, %v741_v28  ;;  %v286_v15 = vld [vmem:[#allocation5 + $0x5] ss:$8 sm:$0x3] }
  0xdc   :  { %v786_v31 = vpop.permute.xlu1 %334  ;;  %v788_v32 = vpop.permute.xlu0 %320  ;;  %v142_v28 = vmul.f32 %v138_v43, %v111_v39  ;;  %v814_v40 = vrot.slane %v240_v45, %v746_v35  ;;  %v850_v45 = vrot.slane %v424_v33, %v746_v35 }
  0xdd   :  { %v143_v37 = vadd.f32 %v139_v48, %v93_v24  ;;  %v144_v38 = vadd.f32 %v140_v49, %v94_v30  ;;  %v183_v49 = vmul.f32 %v174_v46, %v168_v62  ;;  %v141_v34 = vmul.f32 %v137_v22, %v113_v42  ;;  %v332_v24 = vld [vmem:[#allocation5 + $0x6] ss:$8 sm:$0x3] }
  0xde   :  { %v95_v46 = vmul.f32 %v91_v21, %v737_v26  ;;  %v229_v62 = vmul.f32 %v805_v52, %v214_v63  ;;  %v146_v23 = vadd.f32 %v142_v28, %v96_v47  ;;  %v262_v58 = vmul.f32 %v814_v40, %v247_v12 }
  0xdf   :  { %v800_v50 = vadd.f32 %v185_v56, %v143_v37  ;;  %v802_v48 = vadd.f32 %v186_v57, %v144_v38  ;;  %v187_v56 = vmul.f32 %v183_v49, %v159_v55  ;;  %v188_v57 = vmul.f32 %v184_v51, %v157_v54 }
  0xe0   :  { %v325_v27 = vpop.permute.xlu0 %324  ;;  %v145_v20 = vadd.f32 %v141_v34, %v95_v46  ;;  %v834_v30 = vrot.slane %v286_v15, %v746_v35  ;;  %v837_v63 = vrot.slane %v286_v15, %v748_v36  ;;  %v233_v39 = vmul.f32 %v229_v62, %v205_v25 }
  0xe1   :  { %v811_v29 = vpop.permute.xlu1 %380  ;;  %v192_v38 = vadd.f32 %v188_v57, %v146_v23  ;;  %v234_v42 = vmul.f32 %v230_v14, %v203_v19  ;;  %v840_v22 = vrot.slane %v332_v24, %v746_v35  ;;  %v843_v43 = vrot.slane %v332_v24, %v748_v36 }
  0xe2   :  { %v191_v37 = vadd.f32 %v187_v56, %v145_v20  ;;  %v266_v21 = vmul.f32 %v262_v58, %v665_v5  ;;  %v853_v49 = vrot.slane %v424_v33, %v748_v36  ;;  %v860_v28 = vrot.slane %v378_v59, %v746_v35 }
  0xe3   :  { %v354_v51 = vmul.f32 %v840_v22, %v769_v7  ;;  %v355_v34 = vmul.f32 %v843_v43, %v769_v7  ;;  %v863_v46 = vrot.slane %v378_v59, %v748_v36  ;;  %v238_v4 = vadd.f32 %v234_v42, %v192_v38 }
  0xe4   :  { %v367_v16 = vpop.permute.xlu0 %366  ;;  %v237_v5 = vadd.f32 %v233_v39, %v191_v37  ;;  %v328_v47 = vsel %vm326_vm5, %v788_v32, %v325_v27  ;;  %v330_v54 = vsel %vm326_vm5, %v325_v27, %v788_v32  ;;  %v308_v7 = vmul.f32 %v834_v30, %v783_v18 }
  0xe5   :  { %v385_v26 = vpop.permute.xlu1 %384  ;;  %v309_v35 = vmul.f32 %v837_v63, %v783_v18  ;;  %v271_v57 = vadd.f32 %v267_v44, %v238_v4  ;;  %v358_v27 = vmul.f32 %v354_v51, %v328_v47  ;;  %v359_v14 = vmul.f32 %v355_v34, %v330_v54 }
  0xe6   :  { %v270_v56 = vadd.f32 %v266_v21, %v237_v5  ;;  %v400_v25 = vmul.f32 %v860_v28, %v385_v26  ;;  %v401_v18 = vmul.f32 %v863_v46, %v385_v26  ;;  %v227_v54 = vmul.f32 %v805_v52, %v771_v8 }
  0xe8   :  { %v371_v61 = vpop.permute.xlu0 %370 }
  0xe9   :  { %v275_v12 = vpop.permute.xlu1 %274  ;;  %v374_v20 = vsel %vm372_vm6, %v367_v16, %v371_v61  ;;  %v376_v23 = vsel %vm372_vm6, %v371_v61, %v367_v16 }
  0xea   :  { %v404_v42 = vmul.f32 %v400_v25, %v374_v20  ;;  %v405_v59 = vmul.f32 %v401_v18, %v376_v23  ;;  %v398_v18 = vmul.f32 %v860_v28, %v811_v29  ;;  %v399_v20 = vmul.f32 %v863_v46, %v811_v29 }
  0xec   :  { %v413_v55 = vpop.permute.xlu0 %412 }
  0xed   :  { %v279_v36 = vpop.permute.xlu1 %278 }
  0xee   :  { %v282_v62 = vsel %vm280_vm4, %v275_v12, %v279_v36  ;;  %v284_v32 = vsel %vm280_vm4, %v279_v36, %v275_v12 }
  0xef   :  { %v312_v15 = vmul.f32 %v308_v7, %v282_v62  ;;  %v313_v19 = vmul.f32 %v309_v35, %v284_v32 }
  0xf0   :  { %v417_v24 = vpop.permute.xlu0 %416 }
  0xf1   :  { %v316_v58 = vadd.f32 %v312_v15, %v270_v56  ;;  %v317_v60 = vadd.f32 %v313_v19, %v271_v57  ;;  %v420_v33 = vsel %vm418_vm7, %v413_v55, %v417_v24  ;;  %v422_v37 = vsel %vm418_vm7, %v417_v24, %v413_v55  ;;  %v431_v38 = vpop.permute.xlu1 %430 }
  0xf2   :  { %v446_v39 = vmul.f32 %v850_v45, %v431_v38  ;;  %v447_v26 = vmul.f32 %v853_v49, %v431_v38  ;;  %v228_v55 = vmul.f32 %v808_v53, %v771_v8  ;;  %v202_v56 = vsel %vm201_vm3, %v763_v0, %v767_v6 }
  0xf3   :  { %v362_v12 = vadd.f32 %v358_v27, %v316_v58  ;;  %v363_v21 = vadd.f32 %v359_v14, %v317_v60  ;;  %v204_v57 = vsel %vm201_vm3, %v767_v6, %v763_v0  ;;  %v260_v8 = vmul.f32 %v814_v40, %v775_v10 }
  0xf4   :  { %v450_v44 = vmul.f32 %v446_v39, %v420_v33  ;;  %v451_v16 = vmul.f32 %v447_v26, %v422_v37  ;;  %v466_v47 = vpop.permute.xlu0 %465  ;;  %v231_v62 = vmul.f32 %v227_v54, %v204_v57  ;;  %v232_v52 = vmul.f32 %v228_v55, %v202_v56 }
  0xf5   :  { %v408_v61 = vadd.f32 %v404_v42, %v362_v12  ;;  %v409_v51 = vadd.f32 %v405_v59, %v363_v21  ;;  %v319_v34 = vpop.permute.xlu1 %318  ;;  %v261_v53 = vmul.f32 %v817_v41, %v775_v10  ;;  %v306_v15 = vmul.f32 %v834_v30, %v765_v1 }
  0xf6   :  { %v235_v27 = vadd.f32 %v231_v62, %v800_v50  ;;  %v236_v14 = vadd.f32 %v232_v52, %v802_v48  ;;  %v307_v19 = vmul.f32 %v837_v63, %v765_v1  ;;  %v264_v0 = vmul.f32 %v260_v8, %v659_v3 }
  0xf7   :  { %v454_v5 = vadd.f32 %v450_v44, %v408_v61  ;;  %v455_v4 = vadd.f32 %v451_v16, %v409_v51  ;;  %v265_v6 = vmul.f32 %v261_v53, %v657_v2  ;;  %v281_v10 = vsel %vm280_vm4, %v773_v9, %v777_v11 }
  0xf8   :  { %v283_v50 = vsel %vm280_vm4, %v777_v11, %v773_v9  ;;  %v352_v2 = vmul.f32 %v840_v22, %v786_v31  ;;  %v353_v3 = vmul.f32 %v843_v43, %v786_v31  ;;  %v268_v41 = vadd.f32 %v264_v0, %v235_v27 }
  0xf9   :  { %v470_v7 = vadd.f32 %v466_v47, %v454_v5  ;;  %v471_v35 = vadd.f32 %v466_v47, %v455_v4  ;;  %v323_v36 = vpop.permute.xlu1 %322  ;;  %v269_v30 = vadd.f32 %v265_v6, %v236_v14  ;;  %v310_v63 = vmul.f32 %v306_v15, %v281_v10 }
  0xfa   :  { %v327_v40 = vsel %vm326_vm5, %v319_v34, %v323_v36  ;;  %v329_v1 = vsel %vm326_vm5, %v323_v36, %v319_v34  ;;  %v311_v25 = vmul.f32 %v307_v19, %v283_v50  ;;  %v444_v33 = vmul.f32 %v850_v45, %v779_v13 }
  0xfb   :  { %474 = vst [vmem:[#allocation7 + $0x10] sm:$0xff] %v470_v7  ;;  %475 = vst [vmem:[#allocation7 + $0x18] sm:$0xff] %v471_v35  ;;  %v356_v22 = vmul.f32 %v352_v2, %v327_v40  ;;  %v357_v23 = vmul.f32 %v353_v3, %v329_v1  ;;  %v314_v31 = vadd.f32 %v310_v63, %v268_v41 }
  0xfc   :  { %v315_v43 = vadd.f32 %v311_v25, %v269_v30  ;;  %v445_v37 = vmul.f32 %v853_v49, %v779_v13 }
  0xfd   :  { %v365_v32 = vpop.permute.xlu1 %364  ;;  %v360_v38 = vadd.f32 %v356_v22, %v314_v31 }
  0xfe   :  { %v361_v39 = vadd.f32 %v357_v23, %v315_v43 }
 0x101   :  { %v369_v48 = vpop.permute.xlu1 %368 }
 0x102   :  { %v373_v9 = vsel %vm372_vm6, %v365_v32, %v369_v48  ;;  %v375_v11 = vsel %vm372_vm6, %v369_v48, %v365_v32 }
 0x103   :  { %v402_v58 = vmul.f32 %v398_v18, %v373_v9  ;;  %v403_v60 = vmul.f32 %v399_v20, %v375_v11 }
 0x105   :  { %v411_v24 = vpop.permute.xlu1 %410  ;;  %v406_v59 = vadd.f32 %v402_v58, %v360_v38  ;;  %v407_v12 = vadd.f32 %v403_v60, %v361_v39 }
 0x109   :  { %v415_v26 = vpop.permute.xlu1 %414 }
 0x10a   :  { %v419_v28 = vsel %vm418_vm7, %v411_v24, %v415_v26  ;;  %v421_v29 = vsel %vm418_vm7, %v415_v26, %v411_v24 }
 0x10b   :  { %v448_v46 = vmul.f32 %v444_v33, %v419_v28  ;;  %v449_v42 = vmul.f32 %v445_v37, %v421_v29 }
 0x10d   :  { %v461_v21 = vpop.permute.xlu1 %460  ;;  %v452_v45 = vadd.f32 %v448_v46, %v406_v59  ;;  %v453_v44 = vadd.f32 %v449_v42, %v407_v12 }
 0x10f   :  { %v468_v16 = vadd.f32 %v461_v21, %v452_v45  ;;  %v469_v13 = vadd.f32 %v461_v21, %v453_v44 }
 0x111   :  { %472 = vst [vmem:[#allocation7] sm:$0xff] %v468_v16  ;;  %473 = vst [vmem:[#allocation7 + $0x8] sm:$0xff] %v469_v13 }
 0x112   :  { %583 = shalt.err (!%p580_p0)
}
 0x113   :  { %487 = dma.vmem_to_hbm [thread:$0]  %s482_s13, 512, %s959_s4, [#allocation4], %s599_s18, %s599_s18, %s600_s19  }
 0x114   :  { %596 = dma.done.wait [#allocation4], 512  }
 0x115   :  { %597 = vsyncadd [#allocation4], 4294966784 }
 0x116   :  { %491 = vsyncpa [#allocation3], 1 }
 0x117   :  { %492 = vsyncpa [#allocation6], 1 }
 0x118   :  { %493 = vsyncpa [#allocation4], 1 }

</bundles_post_ra>
